<compile_context>
chip_gen: v5e
topology: v5e:2x2
jax: 0.10.0
libtpu: 0.0.40
codegen_flags: <defaults>
</compile_context>

<pallas_src>
import math

import jax
import jax.numpy as jnp
from jax.experimental import pallas as pl
from jax.experimental.pallas import tpu as pltpu


# ---------------------------------------------------------------------------
# In-kernel math helpers
# ---------------------------------------------------------------------------
def _erf(x):
    # Abramowitz & Stegun 7.1.26 rational approximation, |err| < 1.5e-7.
    # Matches PyTorch nn.GELU() (exact, erf-based) to ~f32 precision and uses
    # only VPU mul/add plus one EUP exp.
    a1, a2, a3, a4, a5 = 0.254829592, -0.284496736, 1.421413741, -1.453152027, 1.061405429
    p = 0.3275911
    sgn = jnp.where(x >= 0.0, 1.0, -1.0)
    ax = jnp.abs(x)
    t = 1.0 / (1.0 + p * ax)
    poly = ((((a5 * t + a4) * t + a3) * t + a2) * t + a1) * t
    return sgn * (1.0 - poly * jnp.exp(-ax * ax))


def _gelu_exact(x):
    # PyTorch nn.GELU() default = exact erf-based GELU.
    return 0.5 * x * (1.0 + _erf(x * 0.7071067811865476))


def _round_up(x, m):
    return ((x + m - 1) // m) * m


# ---------------------------------------------------------------------------
# Kernel: one row-tile of the MLP
# ---------------------------------------------------------------------------
def feed_forward_kernel(x_ref, w1_ref, b1_ref, w2_ref, b2_ref, o_ref):
    x = x_ref[...]                                   # [bm, dim]
    w1 = w1_ref[...]                                 # [dim, hidden] (bf16 or f32)
    w2 = w2_ref[...]                                 # [hidden, dim]

    # Linear 1 (MXU, f32 accumulation) + bias + GELU (f32 on VPU/EUP).
    h = jnp.dot(x.astype(w1.dtype), w1, preferred_element_type=jnp.float32)
    h = h + b1_ref[...].astype(jnp.float32)
    h = _gelu_exact(h)

    # Linear 2 (MXU, f32 accumulation) + bias.
    y = jnp.dot(h.astype(w2.dtype), w2, preferred_element_type=jnp.float32)
    y = y + b2_ref[...].astype(jnp.float32)

    # TODO(synk): nn.Dropout layers are identity here (p=0.0 default / eval mode).
    o_ref[...] = y.astype(o_ref.dtype)


# ---------------------------------------------------------------------------
# Wrapper: flatten leading dims, tile rows, call the kernel
# ---------------------------------------------------------------------------
def feed_forward(x, w1, b1, w2, b2, *, block_rows=512, matmul_dtype=jnp.bfloat16):
    """y = Linear(hidden->dim)(GELU(Linear(dim->hidden)(x))), dropout = identity."""
    orig_shape = x.shape
    dim = orig_shape[-1]
    hidden = w1.shape[1]
    assert w1.shape == (dim, hidden), w1.shape
    assert w2.shape == (hidden, dim), w2.shape

    rows = math.prod(orig_shape[:-1]) if len(orig_shape) > 1 else 1
    x2 = x.reshape(rows, dim)

    # Row tile: multiple of 8 (sublane), capped at block_rows; pad rows to a
    # whole number of tiles so every block is full.
    bm = min(block_rows, _round_up(rows, 8))
    rows_p = _round_up(rows, bm)
    if rows_p != rows:
        x2 = jnp.pad(x2, ((0, rows_p - rows), (0, 0)))

    # bf16 weights: half the weight DMA volume, full-rate MXU on v6e/v7x.
    # Accumulation is always f32 (preferred_element_type) inside the kernel.
    w1m = w1.astype(matmul_dtype)
    w2m = w2.astype(matmul_dtype)
    b1r = b1.reshape(1, hidden).astype(jnp.float32)
    b2r = b2.reshape(1, dim).astype(jnp.float32)

    grid = (rows_p // bm,)
    out = pl.pallas_call(
        feed_forward_kernel,
        out_shape=jax.ShapeDtypeStruct((rows_p, dim), x.dtype),
        grid_spec=pltpu.PrefetchScalarGridSpec(
            num_scalar_prefetch=0,
            grid=grid,
            in_specs=[
                pl.BlockSpec((bm, dim), lambda i: (i, 0)),       # x row tile
                pl.BlockSpec((dim, hidden), lambda i: (0, 0)),   # w1 (constant, stays resident)
                pl.BlockSpec((1, hidden), lambda i: (0, 0)),     # b1 (constant)
                pl.BlockSpec((hidden, dim), lambda i: (0, 0)),   # w2 (constant, stays resident)
                pl.BlockSpec((1, dim), lambda i: (0, 0)),        # b2 (constant)
            ],
            out_specs=pl.BlockSpec((bm, dim), lambda i: (i, 0)),
        ),
        compiler_params=pltpu.CompilerParams(
            dimension_semantics=("parallel",),
            vmem_limit_bytes=64 * 1024 * 1024,
        ),
    )(x2, w1m, b1r, w2m, b2r)

    if rows_p != rows:
        out = out[:rows]
    return out.reshape(orig_shape)


# ---------------------------------------------------------------------------
# Demo / self-check
# ---------------------------------------------------------------------------
if __name__ == "__main__":
    # Small shapes consistent with FeedForward(dim, hidden_dim); lane-dense
    # feature dims (multiples of 128) keep every load/store a full vreg.
    batch, seq, dim, hidden_dim = 2, 16, 128, 256

    key = jax.random.PRNGKey(0)
    kx, kw1, kb1, kw2, kb2 = jax.random.split(key, 5)
    x = jax.random.normal(kx, (batch, seq, dim), jnp.float32)
    w1 = 0.02 * jax.random.normal(kw1, (dim, hidden_dim), jnp.float32)
    b1 = 0.01 * jax.random.normal(kb1, (hidden_dim,), jnp.float32)
    w2 = 0.02 * jax.random.normal(kw2, (hidden_dim, dim), jnp.float32)
    b2 = 0.01 * jax.random.normal(kb2, (dim,), jnp.float32)

    # Small block_rows here just to exercise a multi-block "parallel" grid
    # (4 blocks); real workloads should use the default (512) or larger.
    y = feed_forward(x, w1, b1, w2, b2, block_rows=8)
    jax.block_until_ready(y)

    # Pure-JAX f32 reference; loose tolerance covers bf16 MXU operands.
    y_ref = jax.nn.gelu(x @ w1 + b1, approximate=False) @ w2 + b2

    assert y.shape == x.shape, y.shape
    assert bool(jnp.all(jnp.isfinite(y)))
    max_err = float(jnp.max(jnp.abs(y - y_ref)))
    assert max_err < 5e-2, f"max abs error too large: {max_err}"
    print("KERNEL_OK")
</pallas_src>

<mosaic_0001>
module attributes {stable_mosaic.version = 11 : i64} {
  func.func @feed_forward_kernel(%arg0: i32, %arg1: memref<8x128xf32, #tpu.memory_space<vmem>>, %arg2: memref<128x256xbf16, #tpu.memory_space<vmem>>, %arg3: memref<1x256xf32, #tpu.memory_space<vmem>>, %arg4: memref<256x128xbf16, #tpu.memory_space<vmem>>, %arg5: memref<1x128xf32, #tpu.memory_space<vmem>>, %arg6: memref<8x128xf32, #tpu.memory_space<vmem>>) attributes {dimension_semantics = [#tpu.dimension_semantics<parallel>], iteration_bounds = array<i64: 4>, scalar_prefetch = 0 : i64, scratch_operands = 0 : i64, tpu.core_type = #tpu.core_type<tc>, window_params = [{transform_indices = @transform_0, window_bounds = array<i64: 8, 128>}, {pipeline_mode = #tpu.pipeline_mode<synchronous>, transform_indices = @transform_1, window_bounds = array<i64: 128, 256>}, {pipeline_mode = #tpu.pipeline_mode<synchronous>, transform_indices = @transform_2, window_bounds = array<i64: 1, 256>}, {pipeline_mode = #tpu.pipeline_mode<synchronous>, transform_indices = @transform_3, window_bounds = array<i64: 256, 128>}, {pipeline_mode = #tpu.pipeline_mode<synchronous>, transform_indices = @transform_4, window_bounds = array<i64: 1, 128>}, {transform_indices = @transform_5, window_bounds = array<i64: 8, 128>}]} {
    %c0 = arith.constant 0 : index
    %c0_0 = arith.constant 0 : index
    %0 = vector.load %arg1[%c0, %c0_0] : memref<8x128xf32, #tpu.memory_space<vmem>>, vector<8x128xf32>
    %c0_1 = arith.constant 0 : index
    %c0_2 = arith.constant 0 : index
    %1 = vector.load %arg2[%c0_1, %c0_2] : memref<128x256xbf16, #tpu.memory_space<vmem>>, vector<128x256xbf16>
    %c0_3 = arith.constant 0 : index
    %c0_4 = arith.constant 0 : index
    %2 = vector.load %arg4[%c0_3, %c0_4] : memref<256x128xbf16, #tpu.memory_space<vmem>>, vector<256x128xbf16>
    %3 = arith.truncf %0 : vector<8x128xf32> to vector<8x128xbf16>
    %cst = arith.constant dense<0.000000e+00> : vector<8x256xf32>
    %4 = tpu.matmul %3, %1, %cst {dimension_numbers = #tpu.dot_dimension_numbers<[1], [0], [0], [1], [0, 0, 1, 1], [], []>} : vector<8x128xbf16>, vector<128x256xbf16>, vector<8x256xf32> -> vector<8x256xf32>
    %c0_5 = arith.constant 0 : index
    %c0_6 = arith.constant 0 : index
    %5 = vector.load %arg3[%c0_5, %c0_6] : memref<1x256xf32, #tpu.memory_space<vmem>>, vector<1x256xf32>
    %6 = vector.broadcast %5 : vector<1x256xf32> to vector<8x256xf32>
    %7 = arith.addf %4, %6 : vector<8x256xf32>
    %cst_7 = arith.constant 5.000000e-01 : f32
    %8 = vector.broadcast %cst_7 : f32 to vector<8x256xf32>
    %9 = arith.mulf %8, %7 : vector<8x256xf32>
    %cst_8 = arith.constant 0.707106769 : f32
    %10 = vector.broadcast %cst_8 : f32 to vector<8x256xf32>
    %11 = arith.mulf %7, %10 : vector<8x256xf32>
    %cst_9 = arith.constant 0.000000e+00 : f32
    %12 = vector.broadcast %cst_9 : f32 to vector<8x256xf32>
    %13 = arith.cmpf oge, %11, %12 : vector<8x256xf32>
    %cst_10 = arith.constant 1.000000e+00 : f32
    %cst_11 = arith.constant -1.000000e+00 : f32
    %14 = vector.broadcast %cst_10 : f32 to vector<8x256xf32>
    %15 = vector.broadcast %cst_11 : f32 to vector<8x256xf32>
    %16 = arith.select %13, %14, %15 : vector<8x256xi1>, vector<8x256xf32>
    %17 = math.absf %11 : vector<8x256xf32>
    %cst_12 = arith.constant 0.327591091 : f32
    %18 = vector.broadcast %cst_12 : f32 to vector<8x256xf32>
    %19 = arith.mulf %18, %17 : vector<8x256xf32>
    %cst_13 = arith.constant 1.000000e+00 : f32
    %20 = vector.broadcast %cst_13 : f32 to vector<8x256xf32>
    %21 = arith.addf %20, %19 : vector<8x256xf32>
    %cst_14 = arith.constant 1.000000e+00 : f32
    %22 = vector.broadcast %cst_14 : f32 to vector<8x256xf32>
    %23 = arith.divf %22, %21 : vector<8x256xf32>
    %cst_15 = arith.constant 1.06140542 : f32
    %24 = vector.broadcast %cst_15 : f32 to vector<8x256xf32>
    %25 = arith.mulf %24, %23 : vector<8x256xf32>
    %cst_16 = arith.constant -1.45315206 : f32
    %26 = vector.broadcast %cst_16 : f32 to vector<8x256xf32>
    %27 = arith.addf %25, %26 : vector<8x256xf32>
    %28 = arith.mulf %27, %23 : vector<8x256xf32>
    %cst_17 = arith.constant 1.42141378 : f32
    %29 = vector.broadcast %cst_17 : f32 to vector<8x256xf32>
    %30 = arith.addf %28, %29 : vector<8x256xf32>
    %31 = arith.mulf %30, %23 : vector<8x256xf32>
    %cst_18 = arith.constant -0.284496725 : f32
    %32 = vector.broadcast %cst_18 : f32 to vector<8x256xf32>
    %33 = arith.addf %31, %32 : vector<8x256xf32>
    %34 = arith.mulf %33, %23 : vector<8x256xf32>
    %cst_19 = arith.constant 0.254829586 : f32
    %35 = vector.broadcast %cst_19 : f32 to vector<8x256xf32>
    %36 = arith.addf %34, %35 : vector<8x256xf32>
    %37 = arith.mulf %36, %23 : vector<8x256xf32>
    %cst_20 = arith.constant 0.000000e+00 : f32
    %38 = vector.broadcast %cst_20 : f32 to vector<8x256xf32>
    %39 = arith.subf %38, %17 : vector<8x256xf32>
    %40 = arith.mulf %39, %17 : vector<8x256xf32>
    %41 = math.exp %40 : vector<8x256xf32>
    %42 = arith.mulf %37, %41 : vector<8x256xf32>
    %cst_21 = arith.constant 1.000000e+00 : f32
    %43 = vector.broadcast %cst_21 : f32 to vector<8x256xf32>
    %44 = arith.subf %43, %42 : vector<8x256xf32>
    %45 = arith.mulf %16, %44 : vector<8x256xf32>
    %cst_22 = arith.constant 1.000000e+00 : f32
    %46 = vector.broadcast %cst_22 : f32 to vector<8x256xf32>
    %47 = arith.addf %46, %45 : vector<8x256xf32>
    %48 = arith.mulf %9, %47 : vector<8x256xf32>
    %49 = arith.truncf %48 : vector<8x256xf32> to vector<8x256xbf16>
    %cst_23 = arith.constant dense<0.000000e+00> : vector<8x128xf32>
    %50 = tpu.matmul %49, %2, %cst_23 {dimension_numbers = #tpu.dot_dimension_numbers<[1], [0], [0], [1], [0, 0, 1, 1], [], []>} : vector<8x256xbf16>, vector<256x128xbf16>, vector<8x128xf32> -> vector<8x128xf32>
    %c0_24 = arith.constant 0 : index
    %c0_25 = arith.constant 0 : index
    %51 = vector.load %arg5[%c0_24, %c0_25] : memref<1x128xf32, #tpu.memory_space<vmem>>, vector<1x128xf32>
    %52 = vector.broadcast %51 : vector<1x128xf32> to vector<8x128xf32>
    %53 = arith.addf %50, %52 : vector<8x128xf32>
    %c0_26 = arith.constant 0 : index
    %c0_27 = arith.constant 0 : index
    %54 = vector.load %arg6[%c0_26, %c0_27] : memref<8x128xf32, #tpu.memory_space<vmem>>, vector<8x128xf32>
    tpu.vector_store %arg6[%c0_26, %c0_27], %53 {strides = array<i32>} : memref<8x128xf32, #tpu.memory_space<vmem>>, vector<8x128xf32>,
    return
  }
  func.func @transform_0(%arg0: i32) -> (i32, i32) {
    %c0_i32 = arith.constant 0 : i32
    %c0_i32_0 = arith.constant 0 : i32
    return %arg0, %c0_i32 : i32, i32
  }
  func.func @transform_1(%arg0: i32) -> (i32, i32) {
    %c0_i32 = arith.constant 0 : i32
    %c0_i32_0 = arith.constant 0 : i32
    %c0_i32_1 = arith.constant 0 : i32
    return %c0_i32, %c0_i32_0 : i32, i32
  }
  func.func @transform_2(%arg0: i32) -> (i32, i32) {
    %c0_i32 = arith.constant 0 : i32
    %c0_i32_0 = arith.constant 0 : i32
    %c0_i32_1 = arith.constant 0 : i32
    return %c0_i32, %c0_i32_0 : i32, i32
  }
  func.func @transform_3(%arg0: i32) -> (i32, i32) {
    %c0_i32 = arith.constant 0 : i32
    %c0_i32_0 = arith.constant 0 : i32
    %c0_i32_1 = arith.constant 0 : i32
    return %c0_i32, %c0_i32_0 : i32, i32
  }
  func.func @transform_4(%arg0: i32) -> (i32, i32) {
    %c0_i32 = arith.constant 0 : i32
    %c0_i32_0 = arith.constant 0 : i32
    %c0_i32_1 = arith.constant 0 : i32
    return %c0_i32, %c0_i32_0 : i32, i32
  }
  func.func @transform_5(%arg0: i32) -> (i32, i32) {
    %c0_i32 = arith.constant 0 : i32
    %c0_i32_0 = arith.constant 0 : i32
    return %arg0, %c0_i32 : i32, i32
  }
}

</mosaic_0001>

<bundles_post_ra>
// kernel: tpu_custom_call.1
= control target key start
LH: loop header
LB: loop body
LE: loop exit
PB: predicated region body
PF: predicated region fallthrough
CT: control target
= control target key end

     0   :  { %10 = vsyncpa [#allocation3], 0  ;;  %s1459_s0 = inlined_call_operand.hbm [shape: f32[32,128], index: 0, kind: input, shape index: {}]   ;;  %s1460_s1 = inlined_call_operand.hbm [shape: bf16[128,256], index: 1, kind: input, shape index: {}]   ;;  %s1461_s2 = inlined_call_operand.hbm [shape: f32[1,256], index: 2, kind: input, shape index: {}]   ;;  %s1462_s3 = inlined_call_operand.hbm [shape: bf16[256,128], index: 3, kind: input, shape index: {}]   ;;  %s1463_s4 = inlined_call_operand.vmem [shape: f32[1,128], index: 4, kind: input, shape index: {}]   ;;  %s1464_s5 = inlined_call_operand.hbm [shape: f32[32,128], index: 5, kind: output, shape index: {}]  }
   0x1   :  { %12 = vsyncpa [#allocation3 + $0x1], 0 }
   0x2   :  { %13 = vsyncpa [#allocation6], 0 }
   0x3   :  { %14 = vsyncpa [#allocation9], 0 }
   0x4   :  { %15 = vsyncpa [#allocation4], 0 }
   0x5   :  { %17 = vsyncpa [#allocation4 + $0x1], 0  ;;  %s1279_s18 = smov 0   ;;  %s1281_s19 = smov 0  }
   0x6   :  { %s1283_s20 = smov 0   ;;  %s1285_s21 = smov 0  }
   0x7 LB: > { %s175_s24 = sshll.u32 %s1460_s1, 4  ;;  %s1303_s25 = sadd.s32 4294967295, %s1239_s21   ;;  %s1239_s21 = sphi %s1285_s21, %s1474_s21   ;;  %s1235_s20 = sphi %s1283_s20, %s1473_s20   ;;  %s1231_s19 = sphi %s1281_s19, %s1472_s19   ;;  %s1227_s18 = sphi %s1279_s18, %s1471_s18   ;;  %s176_s24 = int_to_ptr.hbm [resolvable:$true] %s175_s24 }
   0x8   : > { %p777_p0 = scmp.ge.s32.totalorder %s1239_s21, 1  ;;  %p44_p1 = scmp.eq.s32.totalorder %s1303_s25, 0 }
   0x9   : > { %p164_p2 = scmp.lt.s32.totalorder %s1239_s21, 5  ;;  %s1241_s27 = smov [#allocation5]  }
   0xa   : > { %s177_s28 = sshll.u32 %s1241_s27, 4  ;;  %s190_s6 = sshll.u32 %s1461_s2, 4  ;;  %s178_s28 = int_to_ptr.vmem [resolvable:$true] %s177_s28  ;;  %s191_s6 = int_to_ptr.hbm [resolvable:$true] %s190_s6 }
   0xb   : > { %p1308_p3 = pnand %p777_p0, %p164_p2  ;;  %s201_s10 = sshll.u32 %s1462_s3, 4  ;;  %s202_s10 = int_to_ptr.hbm [resolvable:$true] %s201_s10 }
   0xc   : > { %s1242_s11 = smov [#allocation7]   ;;  %s1243_s13 = smov 128  }
   0xd   : > { %p970_p4 = pneg %p1308_p3  ;;  %s192_s12 = sshll.u32 %s1242_s11, 4  ;;  %s193_s12 = int_to_ptr.vmem [resolvable:$true] %s192_s12 }
   0xe   : > { %s1244_s14 = smov 8   ;;  %s1245_s15 = smov [#allocation8]  }
   0xf   : > { %p1319_p5 = pnand %p970_p4, %p44_p1  ;;  %s203_s16 = sshll.u32 %s1245_s15, 4  ;;  %s204_s16 = int_to_ptr.vmem [resolvable:$true] %s203_s16 }
  0x10   : > { %s1246_s17 = smov 64   ;;  %s1247_s22 = smov 4  }
  0x11   : > { %973 = dma.hbm_to_vmem [thread:$0]  (!%p1319_p5), %s176_s24, 2048, %s178_s28, [#allocation6], %s1243_s13, %s1243_s13, %s1244_s14  }
  0x12   : > { %976 = dma.hbm_to_vmem [thread:$0]  (!%p1319_p5), %s191_s6, 32, %s193_s12, [#allocation6]  }
  0x13   : > { %979 = dma.hbm_to_vmem [thread:$0]  (!%p1319_p5), %s202_s10, 2048, %s204_s16, [#allocation9], %s1246_s17, %s1246_s17, %s1247_s22  }
  0x14   : > { %s776_s23 = sadd.s32 4294967294, %s1239_s21   ;;  %s1334_s24 = sadd.s32 1, %s1239_s21  }
  0x15   : > { %s30_s27 = sadd.s32 1, %s1235_s20  ;;  %s27_s28 = ssub.s32 %s1239_s21, %s1334_s24 }
  0x16   : > { %p37_p6 = scmp.ne.s32.totalorder %s1235_s20, %s1231_s19  ;;  %p28_p7 = scmp.eq.s32.totalorder %s27_s28, 0 }
  0x17   : > { %p38_p8 = scmp.eq.s32.totalorder %s1239_s21, 0  ;;  %p43_p9 = scmp.ne.s32.totalorder %s1231_s19, %s1227_s18 }
  0x18   : > { %p151_p10 = scmp.eq.s32.totalorder %s1303_s25, 3  ;;  %p157_p13 = scmp.eq.s32.totalorder %s776_s23, 3 }
  0x19   : > { %s1346_s29 = scalar_select %p28_p7, %s1235_s20, %s30_s27  }
  0x1a   : > { %p1350_p11 = por %p44_p1, %p43_p9  ;;  %p1354_p12 = por %p151_p10, %p37_p6 }
  0x1b   : > { %p39_p0 = por %p38_p8, %p37_p6  ;;  %s220_s7 = sand.u32 1, %s1235_s20  }
  0x1c   : > { %p1359_p2 = por %p157_p13, %p43_p9  ;;  %p991_p4 = scmp.lt.s32.totalorder %s1239_s21, 4 }
  0x1d   : > { %s782_s9 = sshll.u32 %s220_s7, 3  ;;  %s783_s10 = sshll.u32 %s1239_s21, 3 }
  0x1e   : > { %s228_s13 = scalar_lea.hbm %s1459_s0, %s783_s10  ;;  %s224_s15 = scalar_lea.vmem [#allocation2], %s782_s9 }
  0x1f   : > { %s230_s14 = sshll.u32 %s228_s13, 4  ;;  %s232_s16 = sshll.u32 %s224_s15, 4  ;;  %s231_s14 = int_to_ptr.hbm [resolvable:$true] %s230_s14  ;;  %s233_s16 = int_to_ptr.vmem [resolvable:$true] %s232_s16 }
  0x20   : > { %p1368_p5 = pnand %p991_p4, %p39_p0  ;;  %s221_s22 = scalar_lea.sflag [#allocation3], %s220_s7 }
  0x21   : > { %s1135_s23 = sshra.s32 %s231_s14, 4  ;;  %s1142_s9 = scalar_lea.hbm %s1459_s0, 32  ;;  %s1136_s23 = int_to_ptr.hbm [resolvable:$true] %s1135_s23 }
  0x22   : > { %s1137_s27 = scalar_lea.hbm %s1136_s23, 8  ;;  %p1139_p7 = pneg %p1368_p5 }
  0x23   : > { %p1138_p6 = scmp.ne.s32.totalorder %s1136_s23, %s1137_s27  ;;  %p1143_p10 = scmp.lt.s32.totalorder %s1136_s23, %s1459_s0 }
  0x24   : > { %p1144_p13 = scmp.lt.s32.totalorder %s1142_s9, %s1137_s27 }
  0x25   : > { %p1140_p8 = pnand %p1139_p7, %p1138_p6 }
  0x26   : > { %p1145_p0 = por %p1144_p13, %p1143_p10 }
  0x27   : > { %p1141_p9 = pneg %p1140_p8 }
  0x29   : > { %p1146_p4 = pnand %p1145_p0, %p1141_p9 }
  0x2b   : > { %1149 = shalt.err (!%p1146_p4)
}
  0x2c   : > { %983 = dma.hbm_to_vmem [thread:$0]  (!%p1368_p5), %s231_s14, 128, %s233_s16, %s221_s22  }
  0x2d   : > { %241 = sbr.rel (%p1308_p3) target bundleno = 413 (0x19d), region = 40  ;;  %s1385_s7 = sand.u32 (!%p1308_p3), 1, %s1231_s19  }
  0x2e   : > { %s785_s13 = sshll.u32 (!%p1308_p3), %s1385_s7, 3  ;;  %s244_s15 = scalar_lea.sflag (!%p1308_p3), [#allocation3], %s1385_s7 }
  0x2f   : > { %s1391_s23 = scalar_lea.vmem (!%p1308_p3), [#allocation2], %s785_s13 }
  0x32   : > { %1210 = dma.done.wait (%p1350_p11), %s244_s15, 128  }
  0x33   : > { %1212 = vsyncadd (%p1350_p11), %s244_s15, 4294967168 }
  0x34   : > { %1214 = dma.done.wait (%p44_p1), [#allocation6], 2080  }
  0x35   : > { %1216 = vsyncadd (%p44_p1), [#allocation6], 4294965216 }
  0x36   : > { %1218 = dma.done.wait (%p44_p1), [#allocation9], 2048  }
  0x37   : > { %1220 = vsyncadd (%p44_p1), [#allocation9], 4294965248  ;;  %v848_v0 = vld [vmem:[#allocation5 + $0x70] sm:$0xf]  ;;  %v937_v1 = vld [vmem:[#allocation5 + $0x74] sm:$0xf0] }
  0x38   : > { %v936_v2 = vld [vmem:[#allocation5 + $0x74] sm:$0xf]  ;;  %v849_v3 = vor.u32 %v937_v1, %v848_v0  ;;  %v850_v4 = vld [vmem:[#allocation5 + $0x78] sm:$0xf0]  ;;  %v840_v5 = vld [vmem:[#allocation5 + $0x60] sm:$0xf] }
  0x39   : > { %v935_v6 = vld [vmem:[#allocation5 + $0x64] sm:$0xf0]  ;;  %v853_v7 = vor.u32 %v936_v2, %v850_v4  ;;  %v934_v8 = vld [vmem:[#allocation5 + $0x64] sm:$0xf]  ;;  %v842_v9 = vld [vmem:[#allocation5 + $0x68] sm:$0xf0] }
  0x3a   : > { %426 = vmatpush.bf16.msra.mxu0 %v849_v3  ;;  %v841_v10 = vor.u32 %v935_v6, %v840_v5  ;;  %v845_v11 = vor.u32 %v934_v8, %v842_v9  ;;  %v832_v12 = vld [vmem:[#allocation5 + $0x50] sm:$0xf]  ;;  %v933_v13 = vld [vmem:[#allocation5 + $0x54] sm:$0xf0]  ;;  %v932_v14 = vld [vmem:[#allocation5 + $0x54] sm:$0xf] }
  0x3b   : > { %439 = vmatpush.bf16.msra.mxu1 %v853_v7  ;;  %v834_v15 = vld [vmem:[#allocation5 + $0x58] sm:$0xf0]  ;;  %v833_v16 = vor.u32 %v933_v13, %v832_v12  ;;  %v824_v18 = vld [vmem:[#allocation5 + $0x40] sm:$0xf]  ;;  %v931_v19 = vld [vmem:[#allocation5 + $0x44] sm:$0xf0] }
  0x3c   : > { %v837_v17 = vor.u32 %v932_v14, %v834_v15  ;;  %v930_v20 = vld [vmem:[#allocation5 + $0x44] sm:$0xf]  ;;  %v826_v21 = vld [vmem:[#allocation5 + $0x48] sm:$0xf0]  ;;  %v825_v22 = vor.u32 %v931_v19, %v824_v18  ;;  %v816_v24 = vld [vmem:[#allocation5 + $0x30] sm:$0xf] }
  0x3d   : > { %v829_v23 = vor.u32 %v930_v20, %v826_v21  ;;  %v929_v25 = vld [vmem:[#allocation5 + $0x34] sm:$0xf0]  ;;  %v928_v26 = vld [vmem:[#allocation5 + $0x34] sm:$0xf]  ;;  %v818_v27 = vld [vmem:[#allocation5 + $0x38] sm:$0xf0] }
  0x3e   : > { %427 = vmatpush.bf16.msra.mxu0 %v841_v10  ;;  %v817_v28 = vor.u32 %v929_v25, %v816_v24  ;;  %v821_v29 = vor.u32 %v928_v26, %v818_v27  ;;  %v808_v30 = vld [vmem:[#allocation5 + $0x20] sm:$0xf]  ;;  %v927_v31 = vld [vmem:[#allocation5 + $0x24] sm:$0xf0]  ;;  %v926_v32 = vld [vmem:[#allocation5 + $0x24] sm:$0xf] }
  0x3f   : > { %440 = vmatpush.bf16.msra.mxu1 %v845_v11  ;;  %v810_v33 = vld [vmem:[#allocation5 + $0x28] sm:$0xf0]  ;;  %v809_v34 = vor.u32 %v927_v31, %v808_v30  ;;  %v800_v36 = vld [vmem:[#allocation5 + $0x10] sm:$0xf]  ;;  %v925_v37 = vld [vmem:[#allocation5 + $0x14] sm:$0xf0] }
  0x40   : > { %v813_v35 = vor.u32 %v926_v32, %v810_v33  ;;  %v924_v38 = vld [vmem:[#allocation5 + $0x14] sm:$0xf]  ;;  %v802_v39 = vld [vmem:[#allocation5 + $0x18] sm:$0xf0]  ;;  %v801_v40 = vor.u32 %v925_v37, %v800_v36  ;;  %v792_v42 = vld [vmem:[#allocation5] sm:$0xf] }
  0x41   : > { %v805_v41 = vor.u32 %v924_v38, %v802_v39  ;;  %v923_v43 = vld [vmem:[#allocation5 + $0x4] sm:$0xf0]  ;;  %v922_v44 = vld [vmem:[#allocation5 + $0x4] sm:$0xf]  ;;  %v794_v45 = vld [vmem:[#allocation5 + $0x8] sm:$0xf0] }
  0x42   : > { %428 = vmatpush.bf16.msra.mxu0 %v833_v16  ;;  %v793_v46 = vor.u32 %v923_v43, %v792_v42  ;;  %v290_v47 = vld [vmem:[%s1391_s23] sm:$0xff]  ;;  %v797_v48 = vor.u32 %v922_v44, %v794_v45  ;;  %v340_v54 = vld [vmem:[#allocation7] sm:$0x3]  ;;  %v942_v59 = vld [vmem:[#allocation8 + $0x20] sm:$0xff]  ;;  %s919_s26 = sshll.u32 %s1303_s25, 3  ;;  %s289_s27 = scalar_lea.vmem [#allocation10], %s785_s13 }
  0x43   : > { %441 = vmatpush.bf16.msra.mxu1 %v837_v17  ;;  %v339_v49 = vpack.c.bf16 %v290_v47, %v290_v47  ;;  %v945_v50 = vld [vmem:[#allocation8 + $0x38] sm:$0xff]  ;;  %v944_v52 = vld [vmem:[#allocation8 + $0x30] sm:$0xff]  ;;  %v943_v55 = vld [vmem:[#allocation8 + $0x28] sm:$0xff]  ;;  %v342_v57 = vperm.slane %v340_v54, 0  ;;  %v343_v58 = vperm.slane %v340_v54, 1  ;;  %s672_s22 = scalar_lea.hbm %s1464_s5, %s919_s26  ;;  %s674_s28 = sshll.u32 %s289_s27, 4  ;;  %s675_s28 = int_to_ptr.vmem [resolvable:$true] %s674_s28 }
  0x44   : > { %v953_v51 = vld [vmem:[#allocation8 + $0x78] sm:$0xff]  ;;  %634 = vmatpush.bf16.msra.mxu2 %v945_v50  ;;  %v952_v53 = vld [vmem:[#allocation8 + $0x70] sm:$0xff]  ;;  %v951_v56 = vld [vmem:[#allocation8 + $0x68] sm:$0xff]  ;;  %s676_s10 = sshll.u32 %s672_s22, 4  ;;  %s662_s25 = scalar_lea.sflag [#allocation4], %s1385_s7  ;;  %s677_s10 = int_to_ptr.hbm [resolvable:$true] %s676_s10 }
  0x45   : > { %647 = vmatpush.bf16.msra.mxu3 %v953_v51  ;;  %v950_v60 = vld [vmem:[#allocation8 + $0x60] sm:$0xff]  ;;  %v941_v2 = vld [vmem:[#allocation8 + $0x18] sm:$0xff]  ;;  %v940_v8 = vld [vmem:[#allocation8 + $0x10] sm:$0xff]  ;;  %s1179_s9 = sshra.s32 %s677_s10, 4  ;;  %s1185_s13 = scalar_lea.hbm %s1464_s5, 32  ;;  %s1180_s9 = int_to_ptr.hbm [resolvable:$true] %s1179_s9 }
  0x46   : > { %429 = vmatpush.bf16.msra.mxu0 %v825_v22  ;;  %v949_v3 = vld [vmem:[#allocation8 + $0x58] sm:$0xff]  ;;  %v948_v9 = vld [vmem:[#allocation8 + $0x50] sm:$0xff]  ;;  %v939_v15 = vld [vmem:[#allocation8 + $0x8] sm:$0xff]  ;;  %s1181_s11 = scalar_lea.hbm %s1180_s9, 8  ;;  %p1186_p5 = scmp.lt.s32.totalorder %s1180_s9, %s1464_s5 }
  0x47   : > { %442 = vmatpush.bf16.msra.mxu1 %v829_v23  ;;  %v947_v16 = vld [vmem:[#allocation8 + $0x48] sm:$0xff]  ;;  %v938_v17 = vld [vmem:[#allocation8] sm:$0xff]  ;;  %p1182_p1 = scmp.ne.s32.totalorder %s1180_s9, %s1181_s11  ;;  %p1187_p6 = scmp.lt.s32.totalorder %s1185_s13, %s1181_s11 }
  0x48   : > { %635 = vmatpush.bf16.msra.mxu2 %v944_v52  ;;  %v946_v18 = vld [vmem:[#allocation8 + $0x40] sm:$0xff] }
  0x49   : > { %648 = vmatpush.bf16.msra.mxu3 %v952_v53  ;;  %p1183_p3 = pnand %p1182_p1, %p1354_p12  ;;  %p1188_p7 = por %p1187_p6, %p1186_p5 }
  0x4a   : > { %430 = vmatpush.bf16.msra.mxu0 %v817_v28 }
  0x4b   : > { %443 = vmatpush.bf16.msra.mxu1 %v821_v29  ;;  %p1184_p11 = pneg %p1183_p3 }
  0x4c   : > { %636 = vmatpush.bf16.msra.mxu2 %v943_v55 }
  0x4d   : > { %649 = vmatpush.bf16.msra.mxu3 %v951_v56  ;;  %p1189_p8 = pnand %p1188_p7, %p1184_p11 }
  0x4e   : > { %431 = vmatpush.bf16.msra.mxu0 %v809_v34 }
  0x4f   : > { %444 = vmatpush.bf16.msra.mxu1 %v813_v35 }
  0x50   : > { %637 = vmatpush.bf16.msra.mxu2 %v942_v59 }
  0x51   : > { %650 = vmatpush.bf16.msra.mxu3 %v950_v60 }
  0x52   : > { %432 = vmatpush.bf16.msra.mxu0 %v801_v40 }
  0x53   : > { %445 = vmatpush.bf16.msra.mxu1 %v805_v41 }
  0x54   : > { %638 = vmatpush.bf16.msra.mxu2 %v941_v2 }
  0x55   : > { %651 = vmatpush.bf16.msra.mxu3 %v949_v3 }
  0x56   : > { %433 = vmatpush.bf16.msra.mxu0 %v793_v46 }
  0x57   : > { %446 = vmatpush.bf16.msra.mxu1 %v797_v48 }
  0x58   : > { %639 = vmatpush.bf16.msra.mxu2 %v940_v8  ;;  %v1248_v8 = vmov -1.0  }
  0x59   : > { %434 = vmatmul.bf16.vlgmr.msra.gmra.mxu0 %v339_v49  ;;  %652 = vmatpush.bf16.msra.mxu3 %v948_v9 }
  0x5a   : > { %447 = vmatmul.bf16.vlgmr.msra.gmra.mxu1 %v339_v49 }
  0x5c   : > { %640 = vmatpush.bf16.msra.mxu2 %v939_v15 }
  0x5d   : > { %653 = vmatpush.bf16.msra.mxu3 %v947_v16 }
  0x60   : > { %641 = vmatpush.bf16.msra.mxu2 %v938_v17 }
  0x61   : > { %654 = vmatpush.bf16.msra.mxu3 %v946_v18 }
  0xd6   : > { %v435_v61 = vpop.f32.mrf.mxu0 }
  0xd7   : > { %v1406_v62 = vadd.f32 %v435_v61, %v342_v57  ;;  %v448_v63 = vpop.f32.mrf.mxu1 }
  0xd8   : > { %v1408_v0 = vadd.f32 %v448_v63, %v343_v58 }
  0xd9   : > { %v1411_v1 = vmul.f32 0.70710677, %v1406_v62 }
  0xda   : > { %v1414_v4 = vmul.f32 0.70710677, %v1408_v0  ;;  %v453_v16 = vmul.f32 0.5, %v1408_v0 }
  0xdb   : > { %v460_v5 = vand.u32 2147483647, %v1411_v1  ;;  %vm456_vm8 = vcmp.ge.f32.partialorder %v1411_v1, 0.0 }
  0xdc   : > { %v461_v6 = vand.u32 2147483647, %v1414_v4  ;;  %vm457_vm9 = vcmp.ge.f32.partialorder %v1414_v4, 0.0  ;;  %v458_v9 = vsel %vm456_vm8, 1.0, %v1248_v8 }
  0xdd   : > { %v462_v7 = vmul.f32 0.3275911, %v460_v5  ;;  %v514_v36 = vsub.f32 0.0, %v460_v5 }
  0xde   : > { %v463_v10 = vmul.f32 0.3275911, %v461_v6  ;;  %v437_v11 = vpop.f32.mrf.mxu0  ;;  %v515_v39 = vsub.f32 0.0, %v461_v6 }
  0xdf   : > { %v464_v12 = vadd.f32 1.0, %v462_v7  ;;  %v450_v13 = vpop.f32.mrf.mxu1  ;;  %v516_v44 = vmul.f32 %v514_v36, %v460_v5 }
  0xe0   : > { %v465_v14 = vadd.f32 1.0, %v463_v10  ;;  %v517_v46 = vmul.f32 %v515_v39, %v461_v6 }
  0xe1   : > { %1037 = vrcp.f32 %v464_v12  ;;  %v477_v25 = vand.u32 2147483648, %v464_v12  ;;  %v475_v27 = vand.u32 2147483647, %v464_v12  ;;  %vm471_vm2 = vweird.f32 %v464_v12 }
  0xe2   : > { %1039 = vrcp.f32 %v465_v14  ;;  %v492_v28 = vand.u32 2147483648, %v465_v14  ;;  %v490_v30 = vand.u32 2147483647, %v465_v14  ;;  %vm486_vm4 = vweird.f32 %v465_v14 }
  0xe3   : > { %v478_v32 = vor.u32 1.1754944e-38, %v477_v25  ;;  %vm476_vm5 = vcmp.eq.f32.partialorder %v475_v27, 8.507059e+37  ;;  %v518_v50 = vmul.f32 1.442695, %v516_v44  ;;  %v520_v52 = vmul.f32 1.442695, %v517_v46 }
  0xe4   : > { %v493_v35 = vor.u32 1.1754944e-38, %v492_v28  ;;  %vm491_vm7 = vcmp.eq.f32.partialorder %v490_v30, 8.507059e+37 }
  0xe5   : > { %1041 = vpow2.f32 %v518_v50 }
  0xe6   : > { %1043 = vpow2.f32 %v520_v52 }
  0xe7   : > { %v1038_v19 = vpop.eup %1037 }
  0xe8   : > { %v1040_v20 = vpop.eup %1039  ;;  %v467_v21 = vmul.f32 %v1038_v19, %v464_v12  ;;  %vm472_vm0 = vweird.f32 %v1038_v19  ;;  %v459_v12 = vsel %vm457_vm9, 1.0, %v1248_v8 }
  0xe9   : > { %v482_v22 = vmul.f32 %v1040_v20, %v465_v14  ;;  %vm487_vm1 = vweird.f32 %v1040_v20  ;;  %vm473_vm3 = vmor %vm471_vm2, %vm472_vm0  ;;  %v452_v14 = vmul.f32 0.5, %v1406_v62 }
  0xea   : > { %v468_v23 = vsub.f32 1.0, %v467_v21  ;;  %vm488_vm6 = vmor %vm486_vm4, %vm487_vm1 }
  0xeb   : > { %v483_v24 = vsub.f32 1.0, %v482_v22  ;;  %v1042_v63 = vpop.eup %1041 }
  0xec   : > { %v469_v26 = vmul.f32 %v1038_v19, %v468_v23  ;;  %v1044_v3 = vpop.eup %1043 }
  0xed   : > { %v484_v29 = vmul.f32 %v1040_v20, %v483_v24 }
  0xee   : > { %v470_v31 = vadd.f32 %v1038_v19, %v469_v26 }
  0xef   : > { %v485_v33 = vadd.f32 %v1040_v20, %v484_v29 }
  0xf0   : > { %v474_v34 = vsel %vm473_vm3, %v1038_v19, %v470_v31 }
  0xf1   : > { %v479_v37 = vsel %vm476_vm5, %v478_v32, %v474_v34  ;;  %v489_v38 = vsel %vm488_vm6, %v1040_v20, %v485_v33  ;;  %v1036_v20 = vld [vmem:[%s1463_s4] ss:$0 sm:$0xff] }
  0xf2   : > { %v496_v40 = vmul.f32 1.0614054, %v479_v37  ;;  %v494_v41 = vsel %vm491_vm7, %v493_v35, %v489_v38 }
  0xf3   : > { %v497_v42 = vmul.f32 1.0614054, %v494_v41 }
  0xf4   : > { %v498_v43 = vadd.f32 -1.4531521, %v496_v40 }
  0xf5   : > { %v499_v45 = vadd.f32 -1.4531521, %v497_v42 }
  0xf6   : > { %v500_v47 = vmul.f32 %v498_v43, %v479_v37 }
  0xf7   : > { %v501_v48 = vmul.f32 %v499_v45, %v494_v41 }
  0xf8   : > { %v502_v49 = vadd.f32 1.4214138, %v500_v47 }
  0xf9   : > { %v503_v51 = vadd.f32 1.4214138, %v501_v48 }
  0xfa   : > { %v504_v53 = vmul.f32 %v502_v49, %v479_v37 }
  0xfb   : > { %v505_v54 = vmul.f32 %v503_v51, %v494_v41 }
  0xfc   : > { %v506_v55 = vadd.f32 -0.28449672, %v504_v53 }
  0xfd   : > { %v507_v56 = vadd.f32 -0.28449672, %v505_v54 }
  0xfe   : > { %v508_v57 = vmul.f32 %v506_v55, %v479_v37 }
  0xff   : > { %v509_v58 = vmul.f32 %v507_v56, %v494_v41 }
 0x100   : > { %v510_v59 = vadd.f32 0.2548296, %v508_v57 }
 0x101   : > { %v511_v60 = vadd.f32 0.2548296, %v509_v58 }
 0x102   : > { %v512_v61 = vmul.f32 %v510_v59, %v479_v37 }
 0x103   : > { %v513_v2 = vmul.f32 %v511_v60, %v494_v41 }
 0x104   : > { %v522_v5 = vmul.f32 %v1042_v63, %v512_v61 }
 0x105   : > { %v523_v6 = vmul.f32 %v1044_v3, %v513_v2 }
 0x106   : > { %v524_v7 = vsub.f32 1.0, %v522_v5 }
 0x107   : > { %v525_v10 = vsub.f32 1.0, %v523_v6 }
 0x108   : > { %v526_v11 = vmul.f32 %v524_v7, %v458_v9 }
 0x109   : > { %v527_v13 = vmul.f32 %v525_v10, %v459_v12 }
 0x10a   : > { %v528_v15 = vadd.f32 1.0, %v526_v11 }
 0x10b   : > { %v529_v17 = vadd.f32 1.0, %v527_v13 }
 0x10c   : > { %v530_v1 = vmul.f32 %v528_v15, %v452_v14 }
 0x10d   : > { %v531_v18 = vmul.f32 %v529_v17, %v453_v16 }
 0x10e   : > { %v532_v19 = vpack.c.bf16 %v530_v1, %v530_v1 }
 0x10f   : > { %v533_v4 = vpack.c.bf16 %v531_v18, %v531_v18 }
 0x110   : > { %642 = vmatmul.bf16.vlgmr.msra.gmra.mxu2 %v532_v19 }
 0x111   : > { %655 = vmatmul.bf16.vlgmr.msra.gmra.mxu3 %v533_v4 }
 0x193   : > { %v643_v62 = vpop.f32.mrf.mxu2 }
 0x194   : > { %v644_v0 = vadd.f32 %v1036_v20, %v643_v62  ;;  %v656_v21 = vpop.f32.mrf.mxu3 }
 0x196   : > { %v657_v22 = vadd.f32 %v656_v21, %v644_v0 }
 0x198   : > { %660 = vst [vmem:[%s289_s27] sm:$0xff] %v657_v22 }
 0x199   : > { %1192 = shalt.err (!%p1189_p8)
}
 0x19a   : > { %968 = dma.vmem_to_hbm [thread:$0]  (%p1354_p12), %s675_s28, 128, %s677_s10, %s662_s25  }
 0x19b   : > { %v645_v23 = vpop.f32.mrf.mxu2 }
 0x19c   : > { %v658_v24 = vpop.f32.mrf.mxu3 }
 0x19d PF: > { %p995_p9 = scmp.ge.s32.totalorder %s1239_s21, 2  ;;  %s688_s7 = sand.u32 1, %s1227_s18  }
 0x19e   : > { %s689_s30 = scalar_lea.sflag [#allocation4], %s688_s7 }
 0x19f   : > { %p985_p10 = pnand %p995_p9, %p1359_p2 }
 0x1a1   : > { %p986_p13 = pneg %p985_p10 }
 0x1a3   : > { %1222 = dma.done.wait (%p986_p13), %s689_s30, 128  }
 0x1a4   : > { %1224 = vsyncadd (%p986_p13), %s689_s30, 4294967168  ;;  %p20_p12 = scmp.ge.s32.totalorder %s1334_s24, 6   ;;  %s1471_s18 = smov %s1231_s19 }
 0x1a5   : > { %s1472_s19 = smov %s1235_s20  ;;  %s1473_s20 = smov %s1346_s29 }
 0x1a6   : > { %s1474_s21 = smov %s1334_s24  ;;  %22 = sbr.rel (!%p20_p12) target bundleno = 7 (0x7), region = 97 }
 0x1ab   :  { %695 = vsyncpa [#allocation3], 1 }
 0x1ac   :  { %697 = vsyncpa [#allocation3 + $0x1], 1 }
 0x1ad   :  { %698 = vsyncpa [#allocation6], 1 }
 0x1ae   :  { %699 = vsyncpa [#allocation9], 1 }
 0x1af   :  { %700 = vsyncpa [#allocation4], 1 }
 0x1b0   :  { %702 = vsyncpa [#allocation4 + $0x1], 1 }

</bundles_post_ra>
